<compile_context>
chip_gen: v7x
topology: tpu7x:2x2x1
jax: 0.10.0
libtpu: 0.0.40
codegen_flags: <defaults>
</compile_context>

<pallas_src>
import jax
import jax.numpy as jnp
from jax import lax
from jax.experimental import pallas as pl
from jax.experimental.pallas import tpu as pltpu


def _cdiv(a: int, b: int) -> int:
    return (a + b - 1) // b


def _round_up(n: int, m: int) -> int:
    return _cdiv(n, m) * m


def _valuenet_kernel(x_ref, w1_ref, b1_ref, w2_ref, b2_ref, o_ref):
    # x_ref : (NCB, S, CH) VMEM  streamed batch tile, batch on the lane axis
    # w1_ref: (H, S)       VMEM  resident (PyTorch fc1.weight layout)
    # b1_ref: (H, 1)       VMEM  resident
    # w2_ref: (H, 1)       VMEM  resident (fc2.weight transposed to a column)
    # b2_ref: (1,)         SMEM  scalar bias
    # o_ref : (NCB, 1, CH) VMEM  lane-dense output rows
    n_chunks, s_dim, _ = x_ref.shape

    # Tiny weights: load once per grid step, closed over by the chunk loop.
    w1 = w1_ref[...]          # (H, S)
    b1 = b1_ref[...]          # (H, 1)
    w2 = w2_ref[...]          # (H, 1)
    b2 = b2_ref[0]            # scalar

    def body(c, carry):
        x_c = x_ref[c]                                   # (S, CH)
        # fc1: K == state_dim is tiny -> S unrolled broadcast multiply-adds on
        # the VPU instead of a K=4->128 padded MXU contraction.  (The (H,1) /
        # (1,CH) broadcasts are re-emitted per chunk; pre-broadcasting all six
        # weight tiles to (H,CH) would cost ~96 vregs, so we don't hoist.)
        h = w1[:, 0:1] * x_c[0:1, :]                     # (H, CH)
        for k in range(1, s_dim):
            h = h + w1[:, k:k + 1] * x_c[k:k + 1, :]
        h = jnp.maximum(h + b1, 0.0)                     # bias + ReLU (VPU)
        # fc2: N = 1 -> VPU multiply + sublane reduction (XLU), lane-dense.
        v = jnp.sum(h * w2, axis=0, keepdims=True)       # (1, CH)
        o_ref[c] = (v + b2).astype(o_ref.dtype)
        return carry

    lax.fori_loop(0, n_chunks, body, 0)


def value_net_forward(x, w1, b1, w2, b2, *, block_b: int = 8192):
    """ValueNet forward: fc2(relu(fc1(x))).

    x : (B, state_dim)
    w1: (hidden, state_dim)   b1: (hidden,)          (PyTorch fc1 layouts)
    w2: (1, hidden)           b2: (1,)               (PyTorch fc2 layouts)
    returns (B, 1) float32, matching the PyTorch module.
    """
    B, S = x.shape
    H = w1.shape[0]

    # ---- batch-on-lanes tiling ------------------------------------------
    # CH rows of the batch live on the 128-lane axis of every vreg.
    CH = min(512, _round_up(B, 128))
    n_chunks_total = _cdiv(B, CH)
    # Chunks per grid step: big tiles amortize the ~0.35us/step overhead, but
    # keep >=2 grid steps when possible so v7x can shard across both TCs.
    ncb = max(1, min(max(block_b, CH) // CH, _cdiv(n_chunks_total, 2)))
    n_chunks_total = _round_up(n_chunks_total, ncb)
    b_pad = n_chunks_total * CH
    grid = (n_chunks_total // ncb,)

    xf = x.astype(jnp.float32)
    if b_pad != B:
        # Pad only up to one tile boundary; fuses with the layout copy below.
        xf = jnp.pad(xf, ((0, b_pad - B), (0, 0)))
    # (n_chunks, S, CH): batch on the lane axis -> lane-dense compute/stores.
    x3 = xf.reshape(n_chunks_total, CH, S).transpose(0, 2, 1)

    w1k = w1.astype(jnp.float32)                    # (H, S)
    b1k = b1.astype(jnp.float32).reshape(H, 1)      # (H, 1)
    w2k = w2.astype(jnp.float32).reshape(H, 1)      # (H, 1) == fc2.weight.T
    b2k = b2.astype(jnp.float32).reshape(1)         # (1,)

    out3 = pl.pallas_call(
        _valuenet_kernel,
        out_shape=jax.ShapeDtypeStruct((n_chunks_total, 1, CH), jnp.float32),
        grid_spec=pltpu.PrefetchScalarGridSpec(
            num_scalar_prefetch=0,
            grid=grid,
            in_specs=[
                pl.BlockSpec((ncb, S, CH), lambda i: (i, 0, 0)),    # x: streamed
                pl.BlockSpec((H, S), lambda i: (0, 0)),             # w1: resident
                pl.BlockSpec((H, 1), lambda i: (0, 0)),             # b1: resident
                pl.BlockSpec((H, 1), lambda i: (0, 0)),             # w2: resident
                pl.BlockSpec(memory_space=pltpu.MemorySpace.SMEM),  # b2 scalar
            ],
            out_specs=pl.BlockSpec((ncb, 1, CH), lambda i: (i, 0, 0)),
        ),
        compiler_params=pltpu.CompilerParams(
            dimension_semantics=("parallel",),   # dual-TC sharding on v7x
        ),
    )(x3, w1k, b1k, w2k, b2k)

    # (n_chunks, 1, CH) flattens in batch order; slice padded rows off.
    return out3.reshape(b_pad, 1)[:B]


def init_params(key, state_dim, hidden_dim):
    """Deterministic init mimicking torch.nn.Linear defaults
    (U[-1/sqrt(fan_in), 1/sqrt(fan_in)]), stored in PyTorch-native layouts:
    w1 (hidden, state), b1 (hidden,), w2 (1, hidden), b2 (1,)."""
    k1, k2, k3, k4 = jax.random.split(key, 4)
    bound1 = 1.0 / float(state_dim) ** 0.5
    bound2 = 1.0 / float(hidden_dim) ** 0.5
    w1 = jax.random.uniform(k1, (hidden_dim, state_dim), jnp.float32, -bound1, bound1)
    b1 = jax.random.uniform(k2, (hidden_dim,), jnp.float32, -bound1, bound1)
    w2 = jax.random.uniform(k3, (1, hidden_dim), jnp.float32, -bound2, bound2)
    b2 = jax.random.uniform(k4, (1,), jnp.float32, -bound2, bound2)
    return w1, b1, w2, b2


if __name__ == "__main__":
    key = jax.random.PRNGKey(0)
    k_params, k_x, k_x2 = jax.random.split(key, 3)

    state_dim, hidden_dim = 4, 32
    w1, b1, w2, b2 = init_params(k_params, state_dim, hidden_dim)

    def ref_fn(xx):
        # Pure-JAX reference with the same semantics as the PyTorch forward.
        return jnp.maximum(xx @ w1.T + b1, 0.0) @ w2.T + b2

    # Small batch: single chunk, single grid step.
    x_small = jax.random.normal(k_x, (8, state_dim), jnp.float32)
    out_small = jax.block_until_ready(value_net_forward(x_small, w1, b1, w2, b2))
    assert out_small.shape == (8, 1)
    assert jnp.allclose(out_small, ref_fn(x_small), atol=1e-5, rtol=1e-5)

    # Larger ragged batch: exercises the multi-step grid (>=2 steps for v7x),
    # the in-kernel chunk loop, resident weights and the tile-tail padding.
    x_big = jax.random.normal(k_x2, (2000, state_dim), jnp.float32)
    out_big = jax.block_until_ready(
        value_net_forward(x_big, w1, b1, w2, b2, block_b=1024))
    assert out_big.shape == (2000, 1)
    assert jnp.allclose(out_big, ref_fn(x_big), atol=1e-5, rtol=1e-5)

    print("KERNEL_OK")
</pallas_src>

<mosaic_0001>
module attributes {stable_mosaic.version = 11 : i64} {
  func.func @_valuenet_kernel(%arg0: i32, %arg1: memref<1x4x128xf32, #tpu.memory_space<vmem>>, %arg2: memref<32x4xf32, #tpu.memory_space<vmem>>, %arg3: memref<32x1xf32, #tpu.memory_space<vmem>>, %arg4: memref<32x1xf32, #tpu.memory_space<vmem>>, %arg5: memref<1xf32, #tpu.memory_space<smem>>, %arg6: memref<1x1x128xf32, #tpu.memory_space<vmem>>) attributes {dimension_semantics = [#tpu.dimension_semantics<parallel>], iteration_bounds = array<i64: 1>, scalar_prefetch = 0 : i64, scratch_operands = 0 : i64, tpu.core_type = #tpu.core_type<tc>, window_params = [{transform_indices = @transform_0, window_bounds = array<i64: 1, 4, 128>}, {pipeline_mode = #tpu.pipeline_mode<synchronous>, transform_indices = @transform_1, window_bounds = array<i64: 32, 4>}, {pipeline_mode = #tpu.pipeline_mode<synchronous>, transform_indices = @transform_2, window_bounds = array<i64: 32, 1>}, {pipeline_mode = #tpu.pipeline_mode<synchronous>, transform_indices = @transform_3, window_bounds = array<i64: 32, 1>}, {transform_indices = @transform_4, window_bounds = array<i64: 1>}, {transform_indices = @transform_5, window_bounds = array<i64: 1, 1, 128>}]} {
    %c0 = arith.constant 0 : index
    %c0_0 = arith.constant 0 : index
    %0 = vector.load %arg2[%c0, %c0_0] : memref<32x4xf32, #tpu.memory_space<vmem>>, vector<32x4xf32>
    %c0_1 = arith.constant 0 : index
    %c0_2 = arith.constant 0 : index
    %1 = vector.load %arg3[%c0_1, %c0_2] : memref<32x1xf32, #tpu.memory_space<vmem>>, vector<32x1xf32>
    %c0_3 = arith.constant 0 : index
    %c0_4 = arith.constant 0 : index
    %2 = vector.load %arg4[%c0_3, %c0_4] : memref<32x1xf32, #tpu.memory_space<vmem>>, vector<32x1xf32>
    %c0_5 = arith.constant 0 : index
    %3 = memref.load %arg5[%c0_5] : memref<1xf32, #tpu.memory_space<smem>>
    %c0_i32 = arith.constant 0 : i32
    %4 = arith.index_cast %c0_i32 : i32 to index
    %c0_6 = arith.constant 0 : index
    %c0_7 = arith.constant 0 : index
    %5 = vector.load %arg1[%4, %c0_6, %c0_7] : memref<1x4x128xf32, #tpu.memory_space<vmem>>, vector<1x4x128xf32>
    %6 = vector.shape_cast %5 : vector<1x4x128xf32> to vector<4x128xf32>
    %7 = vector.extract_strided_slice %0 {offsets = [0, 0], sizes = [32, 1], strides = [1, 1]} : vector<32x4xf32> to vector<32x1xf32>
    %8 = vector.extract_strided_slice %6 {offsets = [0, 0], sizes = [1, 128], strides = [1, 1]} : vector<4x128xf32> to vector<1x128xf32>
    %9 = vector.broadcast %7 : vector<32x1xf32> to vector<32x128xf32>
    %10 = vector.broadcast %8 : vector<1x128xf32> to vector<32x128xf32>
    %11 = arith.mulf %9, %10 : vector<32x128xf32>
    %12 = vector.extract_strided_slice %0 {offsets = [0, 1], sizes = [32, 1], strides = [1, 1]} : vector<32x4xf32> to vector<32x1xf32>
    %13 = vector.extract_strided_slice %6 {offsets = [1, 0], sizes = [1, 128], strides = [1, 1]} : vector<4x128xf32> to vector<1x128xf32>
    %14 = vector.broadcast %12 : vector<32x1xf32> to vector<32x128xf32>
    %15 = vector.broadcast %13 : vector<1x128xf32> to vector<32x128xf32>
    %16 = arith.mulf %14, %15 : vector<32x128xf32>
    %17 = arith.addf %11, %16 : vector<32x128xf32>
    %18 = vector.extract_strided_slice %0 {offsets = [0, 2], sizes = [32, 1], strides = [1, 1]} : vector<32x4xf32> to vector<32x1xf32>
    %19 = vector.extract_strided_slice %6 {offsets = [2, 0], sizes = [1, 128], strides = [1, 1]} : vector<4x128xf32> to vector<1x128xf32>
    %20 = vector.broadcast %18 : vector<32x1xf32> to vector<32x128xf32>
    %21 = vector.broadcast %19 : vector<1x128xf32> to vector<32x128xf32>
    %22 = arith.mulf %20, %21 : vector<32x128xf32>
    %23 = arith.addf %17, %22 : vector<32x128xf32>
    %24 = vector.extract_strided_slice %0 {offsets = [0, 3], sizes = [32, 1], strides = [1, 1]} : vector<32x4xf32> to vector<32x1xf32>
    %25 = vector.extract_strided_slice %6 {offsets = [3, 0], sizes = [1, 128], strides = [1, 1]} : vector<4x128xf32> to vector<1x128xf32>
    %26 = vector.broadcast %24 : vector<32x1xf32> to vector<32x128xf32>
    %27 = vector.broadcast %25 : vector<1x128xf32> to vector<32x128xf32>
    %28 = arith.mulf %26, %27 : vector<32x128xf32>
    %29 = arith.addf %23, %28 : vector<32x128xf32>
    %30 = vector.broadcast %1 : vector<32x1xf32> to vector<32x128xf32>
    %31 = arith.addf %29, %30 : vector<32x128xf32>
    %cst = arith.constant 0.000000e+00 : f32
    %32 = vector.broadcast %cst : f32 to vector<32x128xf32>
    %33 = arith.maximumf %31, %32 : vector<32x128xf32>
    %34 = vector.broadcast %2 : vector<32x1xf32> to vector<32x128xf32>
    %35 = arith.mulf %33, %34 : vector<32x128xf32>
    %cst_8 = arith.constant dense<0.000000e+00> : vector<128xf32>
    %36 = vector.multi_reduction <add>, %35, %cst_8 [0] : vector<32x128xf32> to vector<128xf32>
    %37 = vector.shape_cast %36 : vector<128xf32> to vector<1x128xf32>
    %38 = vector.broadcast %3 : f32 to vector<1x128xf32>
    %39 = arith.addf %37, %38 : vector<1x128xf32>
    %40 = arith.index_cast %c0_i32 : i32 to index
    %c0_9 = arith.constant 0 : index
    %c0_10 = arith.constant 0 : index
    %41 = vector.load %arg6[%40, %c0_9, %c0_10] : memref<1x1x128xf32, #tpu.memory_space<vmem>>, vector<1x1x128xf32>
    %42 = vector.shape_cast %41 : vector<1x1x128xf32> to vector<1x128xf32>
    %43 = vector.shape_cast %39 : vector<1x128xf32> to vector<1x1x128xf32>
    tpu.vector_store %arg6[%40, %c0_9, %c0_10], %43 {strides = array<i32>} : memref<1x1x128xf32, #tpu.memory_space<vmem>>, vector<1x1x128xf32>,
    %c1_i32 = arith.constant 1 : i32
    return
  }
  func.func @transform_0(%arg0: i32) -> (i32, i32, i32) {
    %c0_i32 = arith.constant 0 : i32
    %c0_i32_0 = arith.constant 0 : i32
    %c0_i32_1 = arith.constant 0 : i32
    return %arg0, %c0_i32, %c0_i32_0 : i32, i32, i32
  }
  func.func @transform_1(%arg0: i32) -> (i32, i32) {
    %c0_i32 = arith.constant 0 : i32
    %c0_i32_0 = arith.constant 0 : i32
    %c0_i32_1 = arith.constant 0 : i32
    return %c0_i32, %c0_i32_0 : i32, i32
  }
  func.func @transform_2(%arg0: i32) -> (i32, i32) {
    %c0_i32 = arith.constant 0 : i32
    %c0_i32_0 = arith.constant 0 : i32
    %c0_i32_1 = arith.constant 0 : i32
    return %c0_i32, %c0_i32_0 : i32, i32
  }
  func.func @transform_3(%arg0: i32) -> (i32, i32) {
    %c0_i32 = arith.constant 0 : i32
    %c0_i32_0 = arith.constant 0 : i32
    %c0_i32_1 = arith.constant 0 : i32
    return %c0_i32, %c0_i32_0 : i32, i32
  }
  func.func @transform_4(%arg0: i32) -> i32 {
    %c0_i32 = arith.constant 0 : i32
    %c0_i32_0 = arith.constant 0 : i32
    return %c0_i32 : i32
  }
  func.func @transform_5(%arg0: i32) -> (i32, i32, i32) {
    %c0_i32 = arith.constant 0 : i32
    %c0_i32_0 = arith.constant 0 : i32
    %c0_i32_1 = arith.constant 0 : i32
    return %arg0, %c0_i32, %c0_i32_0 : i32, i32, i32
  }
}

</mosaic_0001>

<bundles_post_ra>
// kernel: tpu_custom_call.1
= control target key start
LH: loop header
LB: loop body
LE: loop exit
PB: predicated region body
PF: predicated region fallthrough
CT: control target
= control target key end

     0   :  { %v267_v1 = vmov 2   ;;  %v268_v2 = vmov 1   ;;  %s356_s0 = inlined_call_operand.vmem [shape: f32[1,4,128], index: 0, kind: input, shape index: {}]   ;;  %s357_s1 = inlined_call_operand.vmem [shape: f32[32,4], index: 1, kind: input, shape index: {}]   ;;  %s358_s2 = inlined_call_operand.vmem [shape: f32[32,1], index: 2, kind: input, shape index: {}]   ;;  %s359_s3 = inlined_call_operand.vmem [shape: f32[32,1], index: 3, kind: input, shape index: {}]   ;;  %s360_s4 = inlined_call_operand.<no memory space> [shape: f32[1], index: 4, kind: input, shape index: {}]   ;;  %s361_s5 = inlined_call_operand.hbm [shape: f32[1,1,128], index: 5, kind: output, shape index: {}]  }
   0x1   :  { %v22_v0 = vld [vmem:[%s357_s1] sm:$0xff]  ;;  %232 = vset.pattern.permute.xlu0 %v267_v1  ;;  %231 = vset.pattern.permute.xlu1 %v268_v2  ;;  %v23_v3 = vld [vmem:[%s357_s1 + $0x8] sm:$0xff]  ;;  %v25_v4 = vld [vmem:[%s357_s1 + $0x18] sm:$0xff] }
   0x2   :  { %93 = vperm.xlu0 %232, %v22_v0   ;;  %65 = vperm.xlu1 %231, %v22_v0  }
   0x3   :  { %11 = vsyncpa [#allocation4], 0  ;;  %v24_v5 = vld [vmem:[%s357_s1 + $0x10] sm:$0xff]  ;;  %v269_v6 = vmov 3   ;;  %v270_v7 = vmov 0   ;;  %v27_v8 = vld [vmem:[%s358_s2 + $0x8] sm:$0xff]  ;;  %v56_v25 = vlaneseq }
   0x4   :  { %v30_v9 = vld [vmem:[%s359_s3] sm:$0xff]  ;;  %v32_v10 = vld [vmem:[%s359_s3 + $0x10] sm:$0xff]  ;;  %v29_v13 = vld [vmem:[%s358_s2 + $0x18] sm:$0xff]  ;;  %s271_s17 = smov [#allocation3]  }
   0x5   :  { %v26_v11 = vld [vmem:[%s358_s2] sm:$0xff]  ;;  %v28_v12 = vld [vmem:[%s358_s2 + $0x10] sm:$0xff]  ;;  %v31_v14 = vld [vmem:[%s359_s3 + $0x8] sm:$0xff]  ;;  %v57_v28 = vshrl.u32 %v56_v25, 7  ;;  %s218_s18 = sshll.u32 %s271_s17, 4  ;;  %s219_s18 = int_to_ptr.vmem [resolvable:$true] %s218_s18 }
   0x6   :  { %235 = vset.pattern.permute.xlu0 %v268_v2  ;;  %69 = vperm.xlu1 %231, %v23_v3   ;;  %v33_v15 = vld [vmem:[%s359_s3 + $0x18] sm:$0xff]  ;;  %v35_v33 = vld [vmem:[%s356_s0] sm:$0xf]  ;;  %s243_s19 = scalar_lea.vmem %s219_s18, 16  ;;  %s247_s20 = scalar_lea.vmem %s219_s18, 32 }
   0x7   :  { %77 = vperm.xlu0 %235, %v25_v4   ;;  %v58_v29 = vsub.s32 0, %v57_v28  ;;  %v82_v32 = vsub.s32 1, %v57_v28  ;;  %v110_v34 = vsub.s32 2, %v57_v28  ;;  %v138_v36 = vsub.s32 3, %v57_v28  ;;  %p244_p0 = scmp.ne.s32.totalorder %s219_s18, %s243_s19  ;;  %p248_p1 = scmp.lt.s32.totalorder %s219_s18, %s219_s18 }
   0x8   :  { %p249_p2 = scmp.lt.s32.totalorder %s247_s20, %s243_s19 }
   0x9   :  { %v59_v35 = vrot.slane %v35_v33, %v58_v29  ;;  %v83_v38 = vrot.slane %v35_v33, %v82_v32  ;;  %v111_v41 = vrot.slane %v35_v33, %v110_v34  ;;  %v139_v44 = vrot.slane %v35_v33, %v138_v36 }
   0xa   :  { %73 = vperm.xlu1 %231, %v24_v5   ;;  %p250_p3 = por %p249_p2, %p248_p1 }
   0xb   :  { %238 = vset.pattern.permute.xlu0 %v269_v6 }
   0xc   :  { %125 = vperm.xlu0 %238, %v23_v3   ;;  %p251_p4 = pnand %p250_p3, %p244_p0 }
   0xe   :  { %233 = vset.pattern.permute.xlu1 %v267_v1 }
   0xf   :  { %97 = vperm.xlu1 %233, %v23_v3  }
  0x10   :  { %133 = vperm.xlu0 %238, %v25_v4  }
  0x13   :  { %234 = vset.pattern.permute.xlu1 %v270_v7 }
  0x14   :  { %241 = vset.pattern.permute.xlu0 %v270_v7  ;;  %53 = vperm.xlu1 %234, %v25_v4  }
  0x15   :  { %38 = vperm.xlu0 %241, %v22_v0  }
  0x18   :  { %236 = vset.pattern.permute.xlu1 %v267_v1 }
  0x19   :  { %43 = vperm.xlu0 %241, %v23_v3   ;;  %101 = vperm.xlu1 %236, %v24_v5  }
  0x1d   :  { %48 = vperm.xlu0 %241, %v24_v5   ;;  %237 = vset.pattern.permute.xlu1 %v269_v6 }
  0x1e   :  { %121 = vperm.xlu1 %237, %v22_v0  }
  0x21   :  { %155 = vperm.xlu0 %241, %v27_v8  }
  0x22   :  { %239 = vset.pattern.permute.xlu1 %v267_v1 }
  0x23   :  { %105 = vperm.xlu1 %239, %v25_v4  }
  0x25   :  { %178 = vperm.xlu0 %241, %v30_v9  }
  0x27   :  { %240 = vset.pattern.permute.xlu1 %v269_v6 }
  0x28   :  { %129 = vperm.xlu1 %240, %v24_v5  }
  0x29   :  { %188 = vperm.xlu0 %241, %v32_v10  }
  0x2c   :  { %242 = vset.pattern.permute.xlu1 %v270_v7 }
  0x2d   :  { %150 = vperm.xlu1 %242, %v26_v11  }
  0x31   :  { %160 = vperm.xlu1 %242, %v28_v12  }
  0x35   :  { %165 = vperm.xlu1 %242, %v29_v13  }
  0x39   :  { %183 = vperm.xlu1 %242, %v31_v14  }
  0x3d   :  { %193 = vperm.xlu1 %242, %v33_v15  }
  0x81   :  { %v66_v16 = vpop.permute.xlu1 %65  ;;  %v94_v17 = vpop.permute.xlu0 %93 }
  0x82   :  { %v84_v45 = vmul.f32 %v83_v38, %v66_v16  ;;  %v112_v52 = vmul.f32 %v111_v41, %v94_v17 }
  0x85   :  { %v70_v18 = vpop.permute.xlu1 %69 }
  0x86   :  { %v78_v19 = vpop.permute.xlu0 %77  ;;  %v85_v42 = vmul.f32 %v83_v38, %v70_v18 }
  0x87   :  { %v87_v53 = vmul.f32 %v83_v38, %v78_v19 }
  0x89   :  { %v74_v20 = vpop.permute.xlu1 %73 }
  0x8a   :  { %v86_v49 = vmul.f32 %v83_v38, %v74_v20 }
  0x8b   :  { %v126_v21 = vpop.permute.xlu0 %125 }
  0x8c   :  { %v141_v54 = vmul.f32 %v139_v44, %v126_v21 }
  0x8e   :  { %v98_v22 = vpop.permute.xlu1 %97 }
  0x8f   :  { %v134_v23 = vpop.permute.xlu0 %133  ;;  %v113_v50 = vmul.f32 %v111_v41, %v98_v22 }
  0x90   :  { %v143_v9 = vmul.f32 %v139_v44, %v134_v23 }
  0x93   :  { %v54_v24 = vpop.permute.xlu1 %53 }
  0x94   :  { %v39_v26 = vpop.permute.xlu0 %38  ;;  %v63_v55 = vmul.f32 %v59_v35, %v54_v24 }
  0x95   :  { %v60_v43 = vmul.f32 %v59_v35, %v39_v26 }
  0x96   :  { %v91_v1 = vadd.f32 %v87_v53, %v63_v55 }
  0x97   :  { %v88_v51 = vadd.f32 %v84_v45, %v60_v43 }
  0x98   :  { %v102_v27 = vpop.permute.xlu1 %101  ;;  %v44_v31 = vpop.permute.xlu0 %43 }
  0x99   :  { %v61_v39 = vmul.f32 %v59_v35, %v44_v31  ;;  %v114_v60 = vmul.f32 %v111_v41, %v102_v27  ;;  %v116_v63 = vadd.f32 %v112_v52, %v88_v51 }
  0x9b   :  { %v89_v46 = vadd.f32 %v85_v42, %v61_v39 }
  0x9c   :  { %v49_v40 = vpop.permute.xlu0 %48 }
  0x9d   :  { %v122_v30 = vpop.permute.xlu1 %121  ;;  %v62_v47 = vmul.f32 %v59_v35, %v49_v40  ;;  %v117_v58 = vadd.f32 %v113_v50, %v89_v46  ;;  %v209_v35 = vstv %s360_s4 }
  0x9e   :  { %v140_v57 = vmul.f32 %v139_v44, %v122_v30 }
  0x9f   :  { %v90_v56 = vadd.f32 %v86_v49, %v62_v47  ;;  %v145_v2 = vadd.f32 %v141_v54, %v117_v58 }
  0xa0   :  { %v156_v0 = vpop.permute.xlu0 %155  ;;  %v144_v3 = vadd.f32 %v140_v57, %v116_v63 }
  0xa1   :  { %v118_v4 = vadd.f32 %v114_v60, %v90_v56  ;;  %v169_v10 = vadd.f32 %v156_v0, %v145_v2 }
  0xa2   :  { %v106_v37 = vpop.permute.xlu1 %105 }
  0xa3   :  { %v115_v61 = vmul.f32 %v111_v41, %v106_v37  ;;  %v173_v16 = vmax.f32 %v169_v10, 0.0 }
  0xa4   :  { %v179_v12 = vpop.permute.xlu0 %178 }
  0xa5   :  { %v119_v6 = vadd.f32 %v115_v61, %v91_v1 }
  0xa7   :  { %v130_v48 = vpop.permute.xlu1 %129  ;;  %v147_v15 = vadd.f32 %v143_v9, %v119_v6 }
  0xa8   :  { %v142_v62 = vmul.f32 %v139_v44, %v130_v48  ;;  %v189_v22 = vpop.permute.xlu0 %188 }
  0xaa   :  { %v146_v8 = vadd.f32 %v142_v62, %v118_v4 }
  0xac   :  { %v151_v59 = vpop.permute.xlu1 %150 }
  0xad   :  { %v168_v7 = vadd.f32 %v151_v59, %v144_v3 }
  0xaf   :  { %v172_v14 = vmax.f32 %v168_v7, 0.0 }
  0xb0   :  { %v161_v5 = vpop.permute.xlu1 %160 }
  0xb1   :  { %v170_v11 = vadd.f32 %v161_v5, %v146_v8  ;;  %v196_v20 = vmul.f32 %v179_v12, %v172_v14 }
  0xb3   :  { %v174_v17 = vmax.f32 %v170_v11, 0.0 }
  0xb4   :  { %v166_v13 = vpop.permute.xlu1 %165 }
  0xb5   :  { %v171_v18 = vadd.f32 %v166_v13, %v147_v15  ;;  %v198_v24 = vmul.f32 %v189_v22, %v174_v17 }
  0xb7   :  { %v175_v25 = vmax.f32 %v171_v18, 0.0 }
  0xb8   :  { %v184_v19 = vpop.permute.xlu1 %183 }
  0xb9   :  { %v197_v21 = vmul.f32 %v184_v19, %v173_v16 }
  0xbb   :  { %v200_v26 = vadd.f32 %v197_v21, %v196_v20 }
  0xbc   :  { %v194_v27 = vpop.permute.xlu1 %193 }
  0xbd   :  { %v201_v28 = vadd.f32 %v200_v26, %v198_v24  ;;  %v199_v29 = vmul.f32 %v194_v27, %v175_v25 }
  0xbf   :  { %v202_v23 = vadd.f32 %v201_v28, %v199_v29 }
  0xc1   :  { %v203_v30 = vrot.slane %v202_v23, 4 }
  0xc3   :  { %v204_v31 = vadd.f32 %v203_v30, %v202_v23 }
  0xc5   :  { %v205_v32 = vrot.slane %v204_v31, 2 }
  0xc7   :  { %v206_v33 = vadd.f32 %v205_v32, %v204_v31 }
  0xc9   :  { %v207_v34 = vrot.slane %v206_v33, 1 }
  0xcb   :  { %v208_v36 = vadd.f32 %v207_v34, %v206_v33 }
  0xcd   :  { %v210_v37 = vadd.f32 %v209_v35, %v208_v36 }
  0xcf   :  { %211 = vst [vmem:[#allocation3] sm:$0x1] %v210_v37 }
  0xd0   :  { %254 = shalt.err (!%p251_p4)
}
  0xd1   :  { %s255_s23 = scalar_lea.hbm %s361_s5, 16 }
  0xd2   :  { %p256_p5 = scmp.ne.s32.totalorder %s361_s5, %s255_s23  ;;  %p259_p6 = scmp.lt.u32.totalorder %s255_s23, %s361_s5 }
  0xd4   :  { %p261_p7 = pnand %p259_p6, %p256_p5 }
  0xd6   :  { %264 = shalt.err (!%p261_p7)
}
  0xd7   :  { %221 = dma.vmem_to_hbm [thread:$0]  %s219_s18, 16, %s361_s5, [#allocation4]  }
  0xd8   :  { %265 = dma.done.wait [#allocation4], 16  }
  0xd9   :  { %266 = vsyncadd [#allocation4], 4294967280 }
  0xda   :  { %225 = vsyncpa [#allocation4], 1 }

</bundles_post_ra>
